<compile_context>
chip_gen: v7x
topology: tpu7x:2x2x1
jax: 0.10.0
libtpu: 0.0.40
codegen_flags: <defaults>
</compile_context>

<pallas_src>
import functools

import jax
import jax.numpy as jnp
from jax.experimental import pallas as pl
from jax.experimental.pallas import tpu as pltpu

_HIDDEN = 64          # nn.Linear(input_dim, 64)
_LANES = 128          # vreg lane width
_NEG_MASK = -1e30     # masks padded logit columns out of the softmax


def _round_up(n, m):
    return ((n + m - 1) // m) * m


# --------------------------------------------------------------------------- #
# Kernels
# --------------------------------------------------------------------------- #
def _attention_kernel(x_ref, w1_ref, b1_ref, w2_ref, b2_ref, o_ref):
    """Plain path: one (rows, D) tile with D a multiple of 128 (lane dense)."""
    # Linear(D, 64) + ReLU.  bf16 MXU operands, f32 accumulation; bias/ReLU/softmax
    # stay f32 on the VPU (v5e has no bf16 VPU/EUP).
    h = jnp.dot(x_ref[...].astype(jnp.bfloat16), w1_ref[...],
                preferred_element_type=jnp.float32)
    h = jnp.maximum(h + b1_ref[...], 0.0)
    # Linear(64, D)
    logits = jnp.dot(h.astype(jnp.bfloat16), w2_ref[...],
                     preferred_element_type=jnp.float32)
    logits = logits + b2_ref[...]
    # Softmax over the feature axis (padded columns hold -1e30 -> exp underflows to 0).
    m = jnp.max(logits, axis=-1, keepdims=True)
    e = jnp.exp(logits - m)
    denom = jnp.sum(e, axis=-1, keepdims=True)
    r = pl.reciprocal(denom, approx=True)          # EUP slot (free in a mem-bound kernel)
    r = r * (2.0 - denom * r)                      # one Newton step -> ~exact 1/denom
    # probs * x : re-read x_ref so no f32 copy of x stays live across the body.
    o_ref[...] = (e * r * x_ref[...]).astype(o_ref.dtype)


def _attention_kernel_packed(x_ref, w1_ref, b1_ref, w2_ref, b2_ref, seg_ref, o_ref):
    """Lane-dense packed path for D < 128: each 128-lane row carries P = 128//D
    independent batch rows; weights are block-diagonal, softmax is segmented."""
    h = jnp.dot(x_ref[...].astype(jnp.bfloat16), w1_ref[...],
                preferred_element_type=jnp.float32)
    h = jnp.maximum(h + b1_ref[...], 0.0)
    logits = jnp.dot(h.astype(jnp.bfloat16), w2_ref[...],
                     preferred_element_type=jnp.float32)
    logits = logits + b2_ref[...]
    # The per-packed-row max is constant within every D-wide segment, so it is a
    # valid stabilizing shift for each segment's softmax.
    m = jnp.max(logits, axis=-1, keepdims=True)
    e = jnp.exp(logits - m)
    # Segmented sums: e @ block_diag(ones(D,D)) broadcasts each segment's sum over
    # its own lanes (f32 matmul; MXU flops are free, the kernel is HBM-bound).
    denom = jnp.dot(e, seg_ref[...], preferred_element_type=jnp.float32)
    r = pl.reciprocal(denom, approx=True)
    r = r * (2.0 - denom * r)
    o_ref[...] = (e * r * x_ref[...]).astype(o_ref.dtype)


# --------------------------------------------------------------------------- #
# Sizing helpers
# --------------------------------------------------------------------------- #
def _vmem_limit_bytes():
    """Scoped-VMEM limit per generation (~3/4 of capacity, capped at 96 MiB)."""
    try:
        cap = pltpu.get_tpu_info().vmem_capacity_bytes   # 128 MiB v5e/v6e, 64 MiB v7x
    except Exception:
        cap = 64 << 20                                    # conservative (v7x) fallback
    return int(min(96 << 20, (cap * 3) // 4))             # 96 MiB v5e/v6e, 48 MiB v7x


def _auto_block_rows(num_rows, d_eff, h_eff, weight_bytes, vmem_limit):
    """Largest 8-row-aligned batch tile that fits VMEM / hits the HBM roofline."""
    # Per-row bytes: double-buffered f32 x + out pipeline tiles (16*d) plus
    # in-kernel temporaries (~16*d; the compiler reuses dead buffers) plus hidden
    # activations (~6*h: f32 + bf16 copies).
    per_row = 32 * d_eff + 6 * h_eff
    usable = int(vmem_limit * 0.85) - weight_bytes
    bb = max(usable, 0) // max(per_row, 1)
    # Byte target: an ~8 MiB x tile is already deep in the HBM-roofline plateau.
    bb = min(bb, (8 << 20) // (4 * d_eff))
    # Keep at least 2 grid steps so the 'parallel' axis splits over v7x's 2 TCs
    # (free on v5e/v6e which have a single TensorCore).
    bb = min(bb, _round_up(pl.cdiv(num_rows, 2), 8))
    bb = max(8, (bb // 8) * 8)                 # sublane alignment only (not 128)
    return int(min(bb, num_rows))


# --------------------------------------------------------------------------- #
# Forward
# --------------------------------------------------------------------------- #
@functools.partial(jax.jit, static_argnames=("block_rows",))
def attention_forward(x, w1, b1, w2, b2, *, block_rows=None):
    """x: (B, D) f32; w1: (D, 64); b1: (64,)|(1,64); w2: (64, D); b2: (D,)|(1,D)."""
    B, D = x.shape
    H = w1.shape[-1]
    b1 = b1.reshape(1, H).astype(jnp.float32)
    b2 = b2.reshape(1, D).astype(jnp.float32)

    # ---- layout selection --------------------------------------------------- #
    packed = D < _LANES and _LANES % D == 0
    if packed:
        # Pack P batch rows into each 128-lane row (lane-dense for small D).
        P = _LANES // D
        d_eff = P * D                                    # == 128
        rows = _round_up(pl.cdiv(B, P), 8)
        total = rows * P
        xp = x if total == B else jnp.pad(x, ((0, total - B), (0, 0)))
        x2d = xp.reshape(rows, d_eff)
        eye = jnp.eye(P, dtype=jnp.float32)
        w1e = jnp.kron(eye, w1.astype(jnp.float32))      # (P*D, P*H) block-diagonal
        w2e = jnp.kron(eye, w2.astype(jnp.float32))      # (P*H, P*D) block-diagonal
        b1e = jnp.tile(b1, (1, P))
        b2e = jnp.tile(b2, (1, P))
        seg = jnp.kron(eye, jnp.ones((D, D), jnp.float32))   # segmented-sum matrix
        h_eff = P * H
    else:
        # TODO(synk): D < 128 with 128 % D != 0 falls back to zero-padding D up to
        # 128 (extra HBM traffic); a partial-pack layout could avoid that.
        P = 1
        d_eff = _round_up(max(D, _LANES), _LANES)
        rows = _round_up(B, 8)
        x2d = x if (rows == B and d_eff == D) else jnp.pad(
            x, ((0, rows - B), (0, d_eff - D)))
        w1e = jnp.pad(w1.astype(jnp.float32), ((0, d_eff - D), (0, 0)))
        w2e = jnp.pad(w2.astype(jnp.float32), ((0, 0), (0, d_eff - D)))
        b1e = b1
        # Padded feature columns are excluded from the softmax via a -1e30 bias.
        b2e = jnp.pad(b2, ((0, 0), (0, d_eff - D)), constant_values=_NEG_MASK)
        seg = None
        h_eff = H

    # ---- pad hidden width to a multiple of 128 (zero cols/rows: exact) ------- #
    h_pad = _round_up(h_eff, _LANES)
    if h_pad != h_eff:
        w1e = jnp.pad(w1e, ((0, 0), (0, h_pad - h_eff)))
        b1e = jnp.pad(b1e, ((0, 0), (0, h_pad - h_eff)))
        w2e = jnp.pad(w2e, ((0, h_pad - h_eff), (0, 0)))

    # bf16 MXU operands (cast once here, not per tile); biases stay f32.
    w1e = w1e.astype(jnp.bfloat16)
    w2e = w2e.astype(jnp.bfloat16)

    # ---- tile sizing ---------------------------------------------------------- #
    vmem_limit = _vmem_limit_bytes()
    if block_rows is None:
        weight_bytes = 2 * (w1e.size + w2e.size) + 4 * (b1e.size + b2e.size)
        if packed:
            weight_bytes += 4 * seg.size
        block_rows = _auto_block_rows(rows, d_eff, h_pad, weight_bytes, vmem_limit)
    block_rows = int(block_rows)
    grid = (pl.cdiv(rows, block_rows),)
    # Note: if block_rows does not divide rows, the tail block reads unspecified
    # rows and its out-of-bounds writes are masked; rows are independent, so this
    # is benign by construction.

    # ---- specs ---------------------------------------------------------------- #
    def _resident_spec(shape):
        # Grid-invariant operand: single-buffer it (index_map never changes, so the
        # default double buffer is pure VMEM waste).
        idx = lambda i: (0,) * len(shape)
        try:
            return pl.BlockSpec(shape, idx, pipeline_mode=pl.Buffered(1))
        except (AttributeError, TypeError, ValueError):
            return pl.BlockSpec(shape, idx)

    in_specs = [
        pl.BlockSpec((block_rows, d_eff), lambda i: (i, 0)),   # x tile (pipelined)
        _resident_spec((d_eff, h_pad)),                        # W1 (bf16)
        _resident_spec((1, h_pad)),                            # b1 (f32)
        _resident_spec((h_pad, d_eff)),                        # W2 (bf16)
        _resident_spec((1, d_eff)),                            # b2 (f32)
    ]
    args = [x2d, w1e, b1e, w2e, b2e]
    if packed:
        in_specs.append(_resident_spec((d_eff, d_eff)))        # segmented-sum ones
        args.append(seg)
        kernel = _attention_kernel_packed
    else:
        kernel = _attention_kernel

    cost = pl.CostEstimate(
        flops=4 * rows * d_eff * h_pad + (2 * rows * d_eff * d_eff if packed else 0),
        transcendentals=rows * d_eff,
        bytes_accessed=8 * rows * d_eff,          # f32 x in + f32 out (weights ~0)
    )

    # TODO(synk): when the caller can donate x, input_output_aliases={0: 0} would
    # drop the extra output allocation; omitted to keep the call copy-safe.
    out2d = pl.pallas_call(
        kernel,
        out_shape=jax.ShapeDtypeStruct((rows, d_eff), x.dtype),
        grid_spec=pltpu.PrefetchScalarGridSpec(
            num_scalar_prefetch=0,
            grid=grid,
            in_specs=in_specs,
            out_specs=pl.BlockSpec((block_rows, d_eff), lambda i: (i, 0)),
        ),
        compiler_params=pltpu.CompilerParams(
            dimension_semantics=("parallel",),
            vmem_limit_bytes=vmem_limit,
        ),
        cost_estimate=cost,
    )(*args)

    if packed:
        return out2d.reshape(rows * P, D)[:B]
    return out2d[:B, :D]


# --------------------------------------------------------------------------- #
# Reference / init / demo
# --------------------------------------------------------------------------- #
def init_params(key, input_dim, hidden=_HIDDEN, dtype=jnp.float32):
    """Deterministic init mimicking nn.Linear's U(-1/sqrt(fan_in), 1/sqrt(fan_in))."""
    k1, k2, k3, k4 = jax.random.split(key, 4)
    lim1 = 1.0 / jnp.sqrt(jnp.float32(input_dim))
    lim2 = 1.0 / jnp.sqrt(jnp.float32(hidden))
    w1 = jax.random.uniform(k1, (input_dim, hidden), dtype, -lim1, lim1)
    b1 = jax.random.uniform(k2, (1, hidden), dtype, -lim1, lim1)
    w2 = jax.random.uniform(k3, (hidden, input_dim), dtype, -lim2, lim2)
    b2 = jax.random.uniform(k4, (1, input_dim), dtype, -lim2, lim2)
    return w1, b1, w2, b2


def reference_forward(x, w1, b1, w2, b2):
    h = jnp.maximum(x @ w1 + b1, 0.0)
    logits = h @ w2 + b2
    probs = jax.nn.softmax(logits, axis=1)
    return probs * x


def _check(batch, input_dim, key):
    kx, kp = jax.random.split(key)
    x = jax.random.normal(kx, (batch, input_dim), jnp.float32)
    w1, b1, w2, b2 = init_params(kp, input_dim)
    out = jax.block_until_ready(attention_forward(x, w1, b1, w2, b2))
    ref = reference_forward(x, w1, b1, w2, b2)
    assert out.shape == (batch, input_dim)
    # bf16 MXU operands -> looser tolerance than pure f32.
    assert jnp.allclose(out, ref, atol=5e-3, rtol=5e-2), (
        f"mismatch vs JAX reference for shape {(batch, input_dim)}")


if __name__ == "__main__":
    key = jax.random.PRNGKey(0)
    k0, k1, k2 = jax.random.split(key, 3)
    _check(64, 32, k0)    # packed lane-dense path (D < 128, P = 4)
    _check(10, 32, k1)    # packed path with batch padding (B % P != 0)
    _check(45, 160, k2)   # plain path: D padded 160 -> 256, hidden 64 -> 128
    print("KERNEL_OK")
</pallas_src>

<mosaic_0001>
module attributes {stable_mosaic.version = 11 : i64} {
  func.func @_attention_kernel_packed(%arg0: i32, %arg1: memref<8x128xf32, #tpu.memory_space<vmem>>, %arg2: memref<128x256xbf16, #tpu.memory_space<vmem>>, %arg3: memref<1x256xf32, #tpu.memory_space<vmem>>, %arg4: memref<256x128xbf16, #tpu.memory_space<vmem>>, %arg5: memref<1x128xf32, #tpu.memory_space<vmem>>, %arg6: memref<128x128xf32, #tpu.memory_space<vmem>>, %arg7: memref<8x128xf32, #tpu.memory_space<vmem>>) attributes {dimension_semantics = [#tpu.dimension_semantics<parallel>], iteration_bounds = array<i64: 2>, scalar_prefetch = 0 : i64, scratch_operands = 0 : i64, tpu.core_type = #tpu.core_type<tc>, window_params = [{transform_indices = @transform_0, window_bounds = array<i64: 8, 128>}, {pipeline_mode = #tpu.pipeline_mode<synchronous>, transform_indices = @transform_1, window_bounds = array<i64: 128, 256>}, {pipeline_mode = #tpu.pipeline_mode<synchronous>, transform_indices = @transform_2, window_bounds = array<i64: 1, 256>}, {pipeline_mode = #tpu.pipeline_mode<synchronous>, transform_indices = @transform_3, window_bounds = array<i64: 256, 128>}, {pipeline_mode = #tpu.pipeline_mode<synchronous>, transform_indices = @transform_4, window_bounds = array<i64: 1, 128>}, {pipeline_mode = #tpu.pipeline_mode<synchronous>, transform_indices = @transform_5, window_bounds = array<i64: 128, 128>}, {transform_indices = @transform_6, window_bounds = array<i64: 8, 128>}]} {
    %c0 = arith.constant 0 : index
    %c0_0 = arith.constant 0 : index
    %0 = vector.load %arg1[%c0, %c0_0] : memref<8x128xf32, #tpu.memory_space<vmem>>, vector<8x128xf32>
    %1 = arith.truncf %0 : vector<8x128xf32> to vector<8x128xbf16>
    %c0_1 = arith.constant 0 : index
    %c0_2 = arith.constant 0 : index
    %2 = vector.load %arg2[%c0_1, %c0_2] : memref<128x256xbf16, #tpu.memory_space<vmem>>, vector<128x256xbf16>
    %cst = arith.constant dense<0.000000e+00> : vector<8x256xf32>
    %3 = tpu.matmul %1, %2, %cst {dimension_numbers = #tpu.dot_dimension_numbers<[1], [0], [0], [1], [0, 0, 1, 1], [], []>} : vector<8x128xbf16>, vector<128x256xbf16>, vector<8x256xf32> -> vector<8x256xf32>
    %c0_3 = arith.constant 0 : index
    %c0_4 = arith.constant 0 : index
    %4 = vector.load %arg3[%c0_3, %c0_4] : memref<1x256xf32, #tpu.memory_space<vmem>>, vector<1x256xf32>
    %5 = vector.broadcast %4 : vector<1x256xf32> to vector<8x256xf32>
    %6 = arith.addf %3, %5 : vector<8x256xf32>
    %cst_5 = arith.constant 0.000000e+00 : f32
    %7 = vector.broadcast %cst_5 : f32 to vector<8x256xf32>
    %8 = arith.maximumf %6, %7 : vector<8x256xf32>
    %9 = arith.truncf %8 : vector<8x256xf32> to vector<8x256xbf16>
    %c0_6 = arith.constant 0 : index
    %c0_7 = arith.constant 0 : index
    %10 = vector.load %arg4[%c0_6, %c0_7] : memref<256x128xbf16, #tpu.memory_space<vmem>>, vector<256x128xbf16>
    %cst_8 = arith.constant dense<0.000000e+00> : vector<8x128xf32>
    %11 = tpu.matmul %9, %10, %cst_8 {dimension_numbers = #tpu.dot_dimension_numbers<[1], [0], [0], [1], [0, 0, 1, 1], [], []>} : vector<8x256xbf16>, vector<256x128xbf16>, vector<8x128xf32> -> vector<8x128xf32>
    %c0_9 = arith.constant 0 : index
    %c0_10 = arith.constant 0 : index
    %12 = vector.load %arg5[%c0_9, %c0_10] : memref<1x128xf32, #tpu.memory_space<vmem>>, vector<1x128xf32>
    %13 = vector.broadcast %12 : vector<1x128xf32> to vector<8x128xf32>
    %14 = arith.addf %11, %13 : vector<8x128xf32>
    %cst_11 = arith.constant dense<0xFF800000> : vector<8xf32>
    %15 = vector.multi_reduction <maximumf>, %14, %cst_11 [1] : vector<8x128xf32> to vector<8xf32>
    %16 = vector.shape_cast %15 : vector<8xf32> to vector<8x1xf32>
    %17 = vector.broadcast %16 : vector<8x1xf32> to vector<8x128xf32>
    %18 = arith.subf %14, %17 : vector<8x128xf32>
    %19 = math.exp %18 : vector<8x128xf32>
    %c0_12 = arith.constant 0 : index
    %c0_13 = arith.constant 0 : index
    %20 = vector.load %arg6[%c0_12, %c0_13] : memref<128x128xf32, #tpu.memory_space<vmem>>, vector<128x128xf32>
    %cst_14 = arith.constant dense<0.000000e+00> : vector<8x128xf32>
    %21 = tpu.matmul %19, %20, %cst_14 {dimension_numbers = #tpu.dot_dimension_numbers<[1], [0], [0], [1], [0, 0, 1, 1], [], []>} : vector<8x128xf32>, vector<128x128xf32>, vector<8x128xf32> -> vector<8x128xf32>
    %22 = tpu.reciprocal %21 {approx = true} : vector<8x128xf32> -> vector<8x128xf32>
    %23 = arith.mulf %21, %22 : vector<8x128xf32>
    %cst_15 = arith.constant 2.000000e+00 : f32
    %24 = vector.broadcast %cst_15 : f32 to vector<8x128xf32>
    %25 = arith.subf %24, %23 : vector<8x128xf32>
    %26 = arith.mulf %22, %25 : vector<8x128xf32>
    %27 = arith.mulf %19, %26 : vector<8x128xf32>
    %c0_16 = arith.constant 0 : index
    %c0_17 = arith.constant 0 : index
    %28 = vector.load %arg1[%c0_16, %c0_17] : memref<8x128xf32, #tpu.memory_space<vmem>>, vector<8x128xf32>
    %29 = arith.mulf %27, %28 : vector<8x128xf32>
    %c0_18 = arith.constant 0 : index
    %c0_19 = arith.constant 0 : index
    %30 = vector.load %arg7[%c0_18, %c0_19] : memref<8x128xf32, #tpu.memory_space<vmem>>, vector<8x128xf32>
    tpu.vector_store %arg7[%c0_18, %c0_19], %29 {strides = array<i32>} : memref<8x128xf32, #tpu.memory_space<vmem>>, vector<8x128xf32>,
    return
  }
  func.func @transform_0(%arg0: i32) -> (i32, i32) {
    %c0_i32 = arith.constant 0 : i32
    %c0_i32_0 = arith.constant 0 : i32
    return %arg0, %c0_i32 : i32, i32
  }
  func.func @transform_1(%arg0: i32) -> (i32, i32) {
    %c0_i32 = arith.constant 0 : i32
    %c0_i32_0 = arith.constant 0 : i32
    %c0_i32_1 = arith.constant 0 : i32
    return %c0_i32, %c0_i32_0 : i32, i32
  }
  func.func @transform_2(%arg0: i32) -> (i32, i32) {
    %c0_i32 = arith.constant 0 : i32
    %c0_i32_0 = arith.constant 0 : i32
    %c0_i32_1 = arith.constant 0 : i32
    return %c0_i32, %c0_i32_0 : i32, i32
  }
  func.func @transform_3(%arg0: i32) -> (i32, i32) {
    %c0_i32 = arith.constant 0 : i32
    %c0_i32_0 = arith.constant 0 : i32
    %c0_i32_1 = arith.constant 0 : i32
    return %c0_i32, %c0_i32_0 : i32, i32
  }
  func.func @transform_4(%arg0: i32) -> (i32, i32) {
    %c0_i32 = arith.constant 0 : i32
    %c0_i32_0 = arith.constant 0 : i32
    %c0_i32_1 = arith.constant 0 : i32
    return %c0_i32, %c0_i32_0 : i32, i32
  }
  func.func @transform_5(%arg0: i32) -> (i32, i32) {
    %c0_i32 = arith.constant 0 : i32
    %c0_i32_0 = arith.constant 0 : i32
    %c0_i32_1 = arith.constant 0 : i32
    return %c0_i32, %c0_i32_0 : i32, i32
  }
  func.func @transform_6(%arg0: i32) -> (i32, i32) {
    %c0_i32 = arith.constant 0 : i32
    %c0_i32_0 = arith.constant 0 : i32
    return %arg0, %c0_i32 : i32, i32
  }
}

</mosaic_0001>

<bundles_post_ra>
// kernel: attention_forward.1
= control target key start
LH: loop header
LB: loop body
LE: loop exit
PB: predicated region body
PF: predicated region fallthrough
CT: control target
= control target key end

     0   :  { %s972_s21 = smov 0   ;;  %s1155_s0 = inlined_call_operand.vmem [shape: f32[16,128], index: 0, kind: input, shape index: {}]   ;;  %s1156_s1 = inlined_call_operand.vmem [shape: bf16[128,256], index: 1, kind: input, shape index: {}]   ;;  %s1157_s2 = inlined_call_operand.vmem [shape: f32[1,256], index: 2, kind: input, shape index: {}]   ;;  %s1158_s3 = inlined_call_operand.vmem [shape: bf16[256,128], index: 3, kind: input, shape index: {}]   ;;  %s1159_s4 = inlined_call_operand.vmem [shape: f32[1,128], index: 4, kind: input, shape index: {}]   ;;  %s1160_s5 = inlined_call_operand.vmem [shape: f32[128,128], index: 5, kind: input, shape index: {}]   ;;  %s1161_s6 = inlined_call_operand.vmem [shape: f32[16,128], index: 6, kind: output, shape index: {}]  }
   0x1 LB: > { %s729_s22 = sadd.s32 4294967295, %s931_s21   ;;  %p733_p0 = scmp.ge.s32.totalorder %s931_s21, 1  ;;  %s931_s21 = sphi %s972_s21, %s16_s21  }
   0x2   : > { %p211_p1 = scmp.lt.s32.totalorder %s931_s21, 3 }
   0x4   : > { %p212_p2 = pnand %p733_p0, %p211_p1 }
   0x5   : > { %v881_v0 = vld [vmem:[%s1156_s1 + $0x4] ss:$8 sps:$4 sm:$0xff] (!%p212_p2)   ;;  %v883_v1 = vld [vmem:[%s1156_s1] ss:$8 sps:$4 sm:$0xff] (!%p212_p2)   ;;  %v933_v2 = vmov (!%p212_p2), 0   ;;  %p239_p3 = scmp.lt.s32.totalorder (!%p212_p2), %s729_s22, 1  ;;  %v268_v35 = vlaneseq (!%p212_p2) }
   0x6   : > { %215 = sbr.rel (%p212_p2) target bundleno = 866 (0x362), region = 44  ;;  %390 = vmatprep.mubr.bf16.mxu0 (!%p212_p2), %v933_v2  ;;  %358 = vmatprep.subr.bf16.mxu0 (!%p212_p2), %v881_v0  ;;  %v884_v3 = vld [vmem:[%s1156_s1 + $0x14] ss:$8 sps:$4 sm:$0xff] (!%p212_p2)   ;;  %v886_v4 = vld [vmem:[%s1156_s1 + $0x10] ss:$8 sps:$4 sm:$0xff] (!%p212_p2)   ;;  %v905_v10 = vld [vmem:[%s1158_s3 + $0x40] sm:$0xff] (!%p212_p2)  }
   0x7   : > { %359 = vmatpush1.bf16.msra.mxu0 (!%p212_p2), %v883_v1  ;;  %v887_v5 = vld [vmem:[%s1156_s1 + $0x24] ss:$8 sps:$4 sm:$0xff] (!%p212_p2)   ;;  %v889_v6 = vld [vmem:[%s1156_s1 + $0x20] ss:$8 sps:$4 sm:$0xff] (!%p212_p2)   ;;  %v890_v7 = vld [vmem:[%s1156_s1 + $0x34] ss:$8 sps:$4 sm:$0xff] (!%p212_p2)   ;;  %771 = vmatprep.subr.bf16.mxu1 (!%p212_p2), %v905_v10 }
   0x8   : > { %360 = vmatprep.subr.bf16.mxu0 (!%p212_p2), %v884_v3  ;;  %v892_v8 = vld [vmem:[%s1156_s1 + $0x30] ss:$8 sps:$4 sm:$0xff] (!%p212_p2)   ;;  %v893_v9 = vld [vmem:[%s1156_s1 + $0x44] ss:$8 sps:$4 sm:$0xff] (!%p212_p2)   ;;  %v895_v12 = vld [vmem:[%s1156_s1 + $0x40] ss:$8 sps:$4 sm:$0xff] (!%p212_p2)  }
   0x9   : > { %v906_v11 = vld [vmem:[%s1158_s3] sm:$0xff] (!%p212_p2)   ;;  %v907_v13 = vld [vmem:[%s1158_s3 + $0x48] sm:$0xff] (!%p212_p2)   ;;  %v909_v15 = vld [vmem:[%s1158_s3 + $0x50] sm:$0xff] (!%p212_p2)   ;;  %v269_v36 = vshrl.u32 (!%p212_p2), %v268_v35, 7  ;;  %v934_v55 = vmov (!%p212_p2), 0.0|0.0   ;;  %vm935_vm0 = vmmov (!%p212_p2), 0  }
   0xa   : > { %772 = vmatpush3.bf16.msra.mxu1 (!%p212_p2), %v906_v11  ;;  %v908_v14 = vld [vmem:[%s1158_s3 + $0x8] sm:$0xff] (!%p212_p2)   ;;  %v896_v16 = vld [vmem:[%s1156_s1 + $0x54] ss:$8 sps:$4 sm:$0xff] (!%p212_p2)   ;;  %v898_v17 = vld [vmem:[%s1156_s1 + $0x50] ss:$8 sps:$4 sm:$0xff] (!%p212_p2)  }
   0xb   : > { %361 = vmatpush1.bf16.msra.mxu0 (!%p212_p2), %v886_v4  ;;  %773 = vmatprep.subr.bf16.mxu1 (!%p212_p2), %v907_v13  ;;  %v910_v18 = vld [vmem:[%s1158_s3 + $0x10] sm:$0xff] (!%p212_p2)   ;;  %v911_v19 = vld [vmem:[%s1158_s3 + $0x58] sm:$0xff] (!%p212_p2)   ;;  %v899_v20 = vld [vmem:[%s1156_s1 + $0x64] ss:$8 sps:$4 sm:$0xff] (!%p212_p2)   ;;  %v270_v37 = vsub.s32 (!%p212_p2), 0, %v269_v36  ;;  %v274_v39 = vsub.s32 (!%p212_p2), 1, %v269_v36 }
   0xc   : > { %362 = vmatprep.subr.bf16.mxu0 (!%p212_p2), %v887_v5  ;;  %v901_v21 = vld [vmem:[%s1156_s1 + $0x60] ss:$8 sps:$4 sm:$0xff] (!%p212_p2)   ;;  %v902_v22 = vld [vmem:[%s1156_s1 + $0x74] ss:$8 sps:$4 sm:$0xff] (!%p212_p2)   ;;  %v904_v26 = vld [vmem:[%s1156_s1 + $0x70] ss:$8 sps:$4 sm:$0xff] (!%p212_p2)  }
   0xd   : > { %s1163_s22 = smov (!%p239_p3, %s729_s22), 1  ;;  %v912_v23 = vld [vmem:[%s1158_s3 + $0x18] sm:$0xff]   ;;  %v913_v24 = vld [vmem:[%s1158_s3 + $0x60] sm:$0xff]   ;;  %v915_v28 = vld [vmem:[%s1158_s3 + $0x68] sm:$0xff]  }
   0xe   : > { %774 = vmatpush3.bf16.msra.mxu1 %v908_v14  ;;  %s734_s13 = sshll.u32 %s1163_s22, 3  ;;  %v914_v25 = vld [vmem:[%s1158_s3 + $0x20] sm:$0xff]   ;;  %v916_v30 = vld [vmem:[%s1158_s3 + $0x28] sm:$0xff]   ;;  %v917_v31 = vld [vmem:[%s1158_s3 + $0x70] sm:$0xff]  }
   0xf   : > { %363 = vmatpush1.bf16.msra.mxu0 %v889_v6  ;;  %775 = vmatprep.subr.bf16.mxu1 %v909_v15  ;;  %s242_s30 = scalar_lea.vmem %s1155_s0, %s734_s13  ;;  %v918_v32 = vld [vmem:[%s1158_s3 + $0x30] sm:$0xff]   ;;  %v919_v33 = vld [vmem:[%s1158_s3 + $0x78] sm:$0xff]   ;;  %v266_v38 = vld [vmem:[%s1157_s2] sm:$0x3]  ;;  %s246_s20 = scalar_lea.vmem %s1161_s6, %s734_s13 }
  0x10   : > { %364 = vmatprep.subr.bf16.mxu0 %v890_v7  ;;  %v1070_v27 = vld [vmem:[%s242_s30] sm:$0xff]  ;;  %v920_v34 = vld [vmem:[%s1158_s3 + $0x38] sm:$0xff]   ;;  %v271_v40 = vrot.slane %v266_v38, %v270_v37  ;;  %v275_v41 = vrot.slane %v266_v38, %v274_v39  ;;  %v584_v53 = vld [vmem:[%s1160_s5 + $0x8] sm:$0xff] }
  0x11   : > { %v249_v29 = vpack.c.bf16 %v1070_v27, %v1070_v27  ;;  %v583_v52 = vld [vmem:[%s1160_s5] sm:$0xff]  ;;  %v585_v54 = vld [vmem:[%s1160_s5 + $0x10] sm:$0xff]  ;;  %v586_v57 = vld [vmem:[%s1160_s5 + $0x18] sm:$0xff] }
  0x12   : > { %776 = vmatpush3.bf16.msra.mxu1 %v910_v18  ;;  %v846_v56 = vpack.c.bf16 %v584_v53, %v583_v52  ;;  %v849_v58 = vpack.c.bf16 %v586_v57, %v585_v54  ;;  %v587_v59 = vld [vmem:[%s1160_s5 + $0x20] sm:$0xff]  ;;  %v588_v60 = vld [vmem:[%s1160_s5 + $0x28] sm:$0xff]  ;;  %v589_v62 = vld [vmem:[%s1160_s5 + $0x30] sm:$0xff] }
  0x13   : > { %365 = vmatpush1.bf16.msra.mxu0 %v892_v8  ;;  %777 = vmatprep.subr.bf16.mxu1 %v911_v19  ;;  %v852_v61 = vpack.c.bf16 %v588_v60, %v587_v59  ;;  %v590_v63 = vld [vmem:[%s1160_s5 + $0x38] sm:$0xff]  ;;  %v752_v3 = vld [vmem:[%s1159_s4] ss:$0 sm:$0xff]  ;;  %v593_v11 = vld [vmem:[%s1160_s5 + $0x50] sm:$0xff]  ;;  %v936_v19 = vmov 0.0  }
  0x14   : > { %366 = vmatprep.subr.bf16.mxu0 %v893_v9  ;;  %v855_v0 = vpack.c.bf16 %v590_v63, %v589_v62  ;;  %v591_v8 = vld [vmem:[%s1160_s5 + $0x40] sm:$0xff]  ;;  %v592_v9 = vld [vmem:[%s1160_s5 + $0x48] sm:$0xff]  ;;  %v598_v18 = vld [vmem:[%s1160_s5 + $0x78] sm:$0xff] }
  0x15   : > { %v858_v10 = vpack.c.bf16 %v592_v9, %v591_v8  ;;  %v595_v14 = vld [vmem:[%s1160_s5 + $0x60] sm:$0xff]  ;;  %v596_v15 = vld [vmem:[%s1160_s5 + $0x68] sm:$0xff] }
  0x16   : > { %778 = vmatpush3.bf16.msra.mxu1 %v912_v23 }
  0x17   : > { %367 = vmatpush1.bf16.msra.mxu0 %v895_v12  ;;  %779 = vmatprep.subr.bf16.mxu1 %v913_v24  ;;  %v594_v12 = vld [vmem:[%s1160_s5 + $0x58] sm:$0xff] }
  0x18   : > { %368 = vmatprep.subr.bf16.mxu0 %v896_v16  ;;  %v861_v13 = vpack.c.bf16 %v594_v12, %v593_v11  ;;  %v864_v16 = vpack.c.bf16 %v596_v15, %v595_v14 }
  0x1a   : > { %780 = vmatpush3.bf16.msra.mxu1 %v914_v25 }
  0x1b   : > { %369 = vmatpush1.bf16.msra.mxu0 %v898_v17  ;;  %781 = vmatprep.subr.bf16.mxu1 %v915_v28  ;;  %v597_v17 = vld [vmem:[%s1160_s5 + $0x70] sm:$0xff] }
  0x1c   : > { %370 = vmatprep.subr.bf16.mxu0 %v899_v20  ;;  %v867_v20 = vpack.c.bf16 %v598_v18, %v597_v17 }
  0x1e   : > { %782 = vmatpush3.bf16.msra.mxu1 %v916_v30 }
  0x1f   : > { %371 = vmatpush1.bf16.msra.mxu0 %v901_v21  ;;  %783 = vmatprep.subr.bf16.mxu1 %v917_v31 }
  0x20   : > { %372 = vmatprep.subr.bf16.mxu0 %v902_v22 }
  0x22   : > { %784 = vmatpush3.bf16.msra.mxu1 %v918_v32 }
  0x23   : > { %373 = vmatpush1.bf16.msra.mxu0 %v904_v26  ;;  %785 = vmatprep.subr.bf16.mxu1 %v919_v33 }
  0x24   : > { %845 = vmatprep.subr.bf16.mxu0 %v934_v55 }
  0x26   : > { %391 = vmatmul.mubr.bf16.vlgmr.msra.gmra.mrb[0].mxu0 %v249_v29  ;;  %786 = vmatpush3.bf16.msra.mxu1 %v920_v34 }
  0x27   : > { %847 = vmatpush3.bf16.msra.mxu0 %v846_v56  ;;  %842 = vmatprep.mubr.msk.f32.mxu0 %vm935_vm0, %v936_v19 }
  0x28   : > { %848 = vmatprep.subr.bf16.mxu0 %v934_v55 }
  0x2b   : > { %850 = vmatpush3.bf16.msra.mxu0 %v849_v58 }
  0x2c   : > { %851 = vmatprep.subr.bf16.mxu0 %v934_v55 }
  0x2f   : > { %853 = vmatpush3.bf16.msra.mxu0 %v852_v61 }
  0x30   : > { %854 = vmatprep.subr.bf16.mxu0 %v934_v55 }
  0x33   : > { %856 = vmatpush3.bf16.msra.mxu0 %v855_v0 }
  0x34   : > { %857 = vmatprep.subr.bf16.mxu0 %v934_v55 }
  0x37   : > { %859 = vmatpush3.bf16.msra.mxu0 %v858_v10 }
  0x38   : > { %860 = vmatprep.subr.bf16.mxu0 %v934_v55 }
  0x3b   : > { %862 = vmatpush3.bf16.msra.mxu0 %v861_v13 }
  0x3c   : > { %863 = vmatprep.subr.bf16.mxu0 %v934_v55 }
  0x3f   : > { %865 = vmatpush3.bf16.msra.mxu0 %v864_v16 }
  0x40   : > { %866 = vmatprep.subr.bf16.mxu0 %v934_v55 }
  0x43   : > { %868 = vmatpush3.bf16.msra.mxu0 %v867_v20 }
  0xf9   : > { %v392_v42 = vpop.f32.mrb[0].mxu0 }
  0xfa   : > { %v393_v43 = vadd.f32 %v392_v42, %v271_v40  ;;  %v394_v44 = vpop.f32.mrb[1].mxu0 }
  0xfb   : > { %v395_v45 = vadd.f32 %v394_v44, %v275_v41  ;;  %v396_v46 = vpop.f32.mrb[2].mxu0 }
  0xfc   : > { %v399_v47 = vmax.f32 %v393_v43, 0.0  ;;  %v397_v48 = vpop.f32.mrb[3].mxu0 }
  0xfd   : > { %v400_v49 = vmax.f32 %v395_v45, 0.0 }
  0xfe   : > { %v401_v51 = vpack.c.bf16 %v399_v47, %v399_v47 }
  0xff   : > { %v402_v50 = vpack.c.bf16 %v400_v49, %v400_v49 }
 0x101   : > { %570 = vmatprep.mubr.bf16.mxu1 %v402_v50 }
 0x102   : > { %571 = vmatmul.mubr.bf16.vlgmr.msra.gmra.mrb[0].mxu1 %v401_v51 }
 0x1d5   : > { %v787_v1 = vpop.f32.mrb[0].mxu1 }
 0x1d6   : > { %v788_v2 = vpop.f32.mrb[1].mxu1 }
 0x1d7   : > { %v789_v4 = vadd.f32 %v788_v2, %v787_v1  ;;  %v790_v5 = vpop.f32.mrb[2].mxu1 }
 0x1d8   : > { %v791_v6 = vpop.f32.mrb[3].mxu1 }
 0x1d9   : > { %v573_v7 = vadd.f32 %v789_v4, %v752_v3 }
 0x1db   : > { %578 = vmax.xlane.f32.xlu0 %v573_v7 }
 0x268   : > { %v579_v21 = vpop.xlane.xlu0 %578 }
 0x269   : > { %v580_v22 = vsub.f32 %v573_v7, %v579_v21 }
 0x26b   : > { %v581_v23 = vmul.f32 1.442695, %v580_v22 }
 0x26d   : > { %921 = vpow2.f32 %v581_v23 }
 0x277   : > { %v922_v24 = vpop.eup %921 }
 0x278   : > { %843 = vmatmul.mubr.f32.vlgmr.msra.gmra.mrb[4].mxu0 %v922_v24 }
 0x34b   : > { %v665_v25 = vpop.f32.mrb[4].mxu0 }
 0x34c   : > { %923 = vrcp.f32 %v665_v25  ;;  %v844_v26 = vpop.f32.mrb[5].mxu0 }
 0x356   : > { %v924_v28 = vpop.eup %923 }
 0x357   : > { %v670_v29 = vmul.f32 %v924_v28, %v665_v25 }
 0x359   : > { %v671_v30 = vsub.f32 2.0, %v670_v29 }
 0x35b   : > { %v672_v31 = vmul.f32 %v924_v28, %v671_v30 }
 0x35d   : > { %v673_v32 = vmul.f32 %v922_v24, %v672_v31 }
 0x35f   : > { %v674_v33 = vmul.f32 %v673_v32, %v1070_v27 }
 0x361   : > { %675 = vst [vmem:[%s246_s20] sm:$0xff] %v674_v33 }
 0x362 PF: > { %s16_s21 = sadd.s32 1, %s931_s21  }
 0x363   : > { %p13_p4 = scmp.ge.s32.totalorder %s16_s21, 4  }
 0x365   :  { %15 = sbr.rel (!%p13_p4) target bundleno = 1 (0x1), region = 74 }

</bundles_post_ra>
